<compile_context>
chip_gen: v5e
topology: v5e:2x2
jax: 0.10.0
libtpu: 0.0.40
codegen_flags: <defaults>
</compile_context>

<pallas_src>
import jax
import jax.numpy as jnp
from jax.experimental import pallas as pl
from jax.experimental.pallas import tpu as pltpu


def gcn_kernel(x_ref, w1e_ref, w2t_ref, bias_ref, o_ref):
    # x_ref   : (Bt, N, F)  activation block in the original (B, N, F) layout
    # w1e_ref : (N, N)      W1 - I   (conv1 weight with the residual folded in)
    # w2t_ref : (F, F)      W2^T     (conv2 weight, transposed once on host)
    # bias_ref: (N, F)      b1[n] * sum_g W2[f, g]  (conv1 bias pushed through conv2)
    # o_ref   : (Bt, N, F)
    Bt, N, F = x_ref.shape

    # conv1 + residual, batched over the batch-tile dim (Mosaic loops the MXU
    # over Bt).  Keeps the native layout -> no wrapper-side transposes.
    w1e_b = jnp.broadcast_to(w1e_ref[...], (Bt, N, N))
    h = jnp.einsum('bnj,bjf->bnf', w1e_b, x_ref[...],
                   preferred_element_type=jnp.float32)          # (Bt, N, F) f32

    # conv2 as one sublane-dense (Bt*N, F) @ (F, F) matmul: full MXU rows and
    # no block-diagonal weight.  h stays f32 through this matmul.
    out = jnp.dot(h.reshape(Bt * N, F), w2t_ref[...],
                  preferred_element_type=jnp.float32)           # (Bt*N, F) f32

    out = out.reshape(Bt, N, F) + bias_ref[...]                 # bias broadcast over batch
    o_ref[...] = jnp.maximum(out, 0.0).astype(o_ref.dtype)


def _pick_batch_tile(B, N, F, itemsize):
    """Largest batch tile that (a) fits a conservative VMEM budget and
    (b) yields >= 2 grid steps so v7x's two TensorCores both get work."""
    if B == 1:
        return 1
    budget = 8 << 20                              # moving (x,out) blocks, double-buffered
    per_batch = N * F * (4 * itemsize + 12)       # 2x2 buffered x/out + f32 temporaries
    max_bt = max(1, budget // max(per_batch, 1))
    target = min(max_bt, (B + 1) // 2)            # >= 2 tiles -> megacore-parallel on v7x
    for bt in range(max(min(target, B), 1), 0, -1):
        if B % bt == 0:
            return bt
    return 1


def _vmem_limit_bytes(Bt, N, F, itemsize):
    moving = 2 * (2 * Bt * N * F * itemsize)            # x + out blocks, double-buffered
    invariant = 2 * (N * N + F * F) * itemsize + 2 * N * F * 4   # w1e, w2t, f32 bias
    temporaries = Bt * N * (2 * F + N) * 4              # f32 h / out / broadcast W1e
    need = moving + invariant + temporaries + (4 << 20)  # headroom
    return int(min(max(need, 8 << 20), 32 << 20))


def gcn_forward(x, w1, b1, w2, *, batch_tile=None):
    """x: (B, N, F); w1: (N, N); b1: (N, 1); w2: (F, F)  ->  (B, N, F)."""
    B, N, F = x.shape
    dt = x.dtype
    itemsize = jnp.dtype(dt).itemsize

    Bt = batch_tile if batch_tile is not None else _pick_batch_tile(B, N, F, itemsize)
    assert B % Bt == 0, "batch tile must divide batch"
    num_tiles = B // Bt

    # ---- one-time host/XLA-side algebraic prep (hoisted out of the kernel) ----
    w1e = (w1 - jnp.eye(N, dtype=w1.dtype)).astype(dt)          # (N, N)  W1 - I
    w2t = jnp.transpose(w2).astype(dt)                          # (F, F)  W2^T
    s = jnp.sum(w2, axis=1)                                     # (F,)    row-sums of W2
    bias = (b1.reshape(N, 1) * s.reshape(1, F)).astype(jnp.float32)   # (N, F)

    out = pl.pallas_call(
        gcn_kernel,
        out_shape=jax.ShapeDtypeStruct((B, N, F), dt),
        grid_spec=pltpu.PrefetchScalarGridSpec(
            num_scalar_prefetch=0,
            grid=(num_tiles,),
            in_specs=[
                pl.BlockSpec((Bt, N, F), lambda i: (i, 0, 0)),  # activations (native layout)
                pl.BlockSpec((N, N), lambda i: (0, 0)),         # W1 - I     (grid-invariant)
                pl.BlockSpec((F, F), lambda i: (0, 0)),         # W2^T       (grid-invariant)
                pl.BlockSpec((N, F), lambda i: (0, 0)),         # fused bias (grid-invariant)
            ],
            out_specs=pl.BlockSpec((Bt, N, F), lambda i: (i, 0, 0)),
        ),
        compiler_params=pltpu.CompilerParams(
            # Batch-tile axis is embarrassingly parallel (>= 2 tiles so v7x's
            # two TensorCores split it; single-TC v5e/v6e just loop).
            dimension_semantics=("parallel",),
            vmem_limit_bytes=_vmem_limit_bytes(Bt, N, F, itemsize),
        ),
    )(x, w1e, w2t, bias)
    return out


def gcn_reference(x, w1, b1, w2):
    # Pure-JAX reference matching the PyTorch forward.
    h = jnp.einsum('nj,bjf->bnf', w1, x) + b1[None, :, :]    # conv1 + bias
    h = h - x                                                 # residual
    out = jnp.einsum('bng,fg->bnf', h, w2)                    # conv2 (no bias)
    return jnp.maximum(out, 0.0)


if __name__ == "__main__":
    B = 2           # batch
    N = 8           # num_node    (conv1 channels)
    F = 32          # num_feature (conv2 channels)

    key = jax.random.PRNGKey(0)
    kx, kw1, kb1, kw2 = jax.random.split(key, 4)

    x = jax.random.normal(kx, (B, N, F), dtype=jnp.float32)
    # Conv1d(num_node, num_node, k=1) weight (N, N, 1) -> squeeze kernel dim
    w1 = jax.random.normal(kw1, (N, N), dtype=jnp.float32) * 0.1
    b1 = jax.random.normal(kb1, (N, 1), dtype=jnp.float32) * 0.1
    # Conv1d(num_feature, num_feature, k=1, bias=False) weight (F, F, 1)
    w2 = jax.random.normal(kw2, (F, F), dtype=jnp.float32) * 0.1

    out = jax.block_until_ready(gcn_forward(x, w1, b1, w2))

    ref = gcn_reference(x, w1, b1, w2)
    assert out.shape == (B, N, F)
    assert jnp.allclose(out, ref, atol=1e-5, rtol=1e-5), "mismatch vs reference"

    print("KERNEL_OK")
</pallas_src>

<mosaic_0001>
module attributes {stable_mosaic.version = 11 : i64} {
  func.func @gcn_kernel(%arg0: i32, %arg1: memref<1x8x32xf32, #tpu.memory_space<vmem>>, %arg2: memref<8x8xf32, #tpu.memory_space<vmem>>, %arg3: memref<32x32xf32, #tpu.memory_space<vmem>>, %arg4: memref<8x32xf32, #tpu.memory_space<vmem>>, %arg5: memref<1x8x32xf32, #tpu.memory_space<vmem>>) attributes {dimension_semantics = [#tpu.dimension_semantics<parallel>], iteration_bounds = array<i64: 2>, scalar_prefetch = 0 : i64, scratch_operands = 0 : i64, tpu.core_type = #tpu.core_type<tc>, window_params = [{transform_indices = @transform_0, window_bounds = array<i64: 1, 8, 32>}, {pipeline_mode = #tpu.pipeline_mode<synchronous>, transform_indices = @transform_1, window_bounds = array<i64: 8, 8>}, {pipeline_mode = #tpu.pipeline_mode<synchronous>, transform_indices = @transform_2, window_bounds = array<i64: 32, 32>}, {pipeline_mode = #tpu.pipeline_mode<synchronous>, transform_indices = @transform_3, window_bounds = array<i64: 8, 32>}, {transform_indices = @transform_4, window_bounds = array<i64: 1, 8, 32>}]} {
    %c0 = arith.constant 0 : index
    %c0_0 = arith.constant 0 : index
    %0 = vector.load %arg2[%c0, %c0_0] : memref<8x8xf32, #tpu.memory_space<vmem>>, vector<8x8xf32>
    %1 = vector.shape_cast %0 : vector<8x8xf32> to vector<1x8x8xf32>
    %c0_1 = arith.constant 0 : index
    %c0_2 = arith.constant 0 : index
    %c0_3 = arith.constant 0 : index
    %2 = vector.load %arg1[%c0_1, %c0_2, %c0_3] : memref<1x8x32xf32, #tpu.memory_space<vmem>>, vector<1x8x32xf32>
    "tpu.trace_start"() <{level = 10 : i32, message = "bnj,bjf->bnf"}> : () -> ()
    %cst = arith.constant dense<0.000000e+00> : vector<1x8x32xf32>
    %3 = tpu.matmul %1, %2, %cst {dimension_numbers = #tpu.dot_dimension_numbers<[2], [1], [1], [2], [0, 0, 0, 1, 1, 2], [0], [0]>} : vector<1x8x8xf32>, vector<1x8x32xf32>, vector<1x8x32xf32> -> vector<1x8x32xf32>
    "tpu.trace_stop"() : () -> ()
    %4 = vector.shape_cast %3 : vector<1x8x32xf32> to vector<8x32xf32>
    %c0_4 = arith.constant 0 : index
    %c0_5 = arith.constant 0 : index
    %5 = vector.load %arg3[%c0_4, %c0_5] : memref<32x32xf32, #tpu.memory_space<vmem>>, vector<32x32xf32>
    %cst_6 = arith.constant dense<0.000000e+00> : vector<8x32xf32>
    %6 = tpu.matmul %4, %5, %cst_6 {dimension_numbers = #tpu.dot_dimension_numbers<[1], [0], [0], [1], [0, 0, 1, 1], [], []>} : vector<8x32xf32>, vector<32x32xf32>, vector<8x32xf32> -> vector<8x32xf32>
    %7 = vector.shape_cast %6 : vector<8x32xf32> to vector<1x8x32xf32>
    %c0_7 = arith.constant 0 : index
    %c0_8 = arith.constant 0 : index
    %8 = vector.load %arg4[%c0_7, %c0_8] : memref<8x32xf32, #tpu.memory_space<vmem>>, vector<8x32xf32>
    %9 = vector.shape_cast %8 : vector<8x32xf32> to vector<1x8x32xf32>
    %10 = arith.addf %7, %9 : vector<1x8x32xf32>
    %cst_9 = arith.constant 0.000000e+00 : f32
    %11 = vector.broadcast %cst_9 : f32 to vector<1x8x32xf32>
    %12 = arith.maximumf %10, %11 : vector<1x8x32xf32>
    %c0_10 = arith.constant 0 : index
    %c0_11 = arith.constant 0 : index
    %c0_12 = arith.constant 0 : index
    %13 = vector.load %arg5[%c0_10, %c0_11, %c0_12] : memref<1x8x32xf32, #tpu.memory_space<vmem>>, vector<1x8x32xf32>
    tpu.vector_store %arg5[%c0_10, %c0_11, %c0_12], %12 {strides = array<i32>} : memref<1x8x32xf32, #tpu.memory_space<vmem>>, vector<1x8x32xf32>,
    return
  }
  func.func @transform_0(%arg0: i32) -> (i32, i32, i32) {
    %c0_i32 = arith.constant 0 : i32
    %c0_i32_0 = arith.constant 0 : i32
    %c0_i32_1 = arith.constant 0 : i32
    return %arg0, %c0_i32, %c0_i32_0 : i32, i32, i32
  }
  func.func @transform_1(%arg0: i32) -> (i32, i32) {
    %c0_i32 = arith.constant 0 : i32
    %c0_i32_0 = arith.constant 0 : i32
    %c0_i32_1 = arith.constant 0 : i32
    return %c0_i32, %c0_i32_0 : i32, i32
  }
  func.func @transform_2(%arg0: i32) -> (i32, i32) {
    %c0_i32 = arith.constant 0 : i32
    %c0_i32_0 = arith.constant 0 : i32
    %c0_i32_1 = arith.constant 0 : i32
    return %c0_i32, %c0_i32_0 : i32, i32
  }
  func.func @transform_3(%arg0: i32) -> (i32, i32) {
    %c0_i32 = arith.constant 0 : i32
    %c0_i32_0 = arith.constant 0 : i32
    %c0_i32_1 = arith.constant 0 : i32
    return %c0_i32, %c0_i32_0 : i32, i32
  }
  func.func @transform_4(%arg0: i32) -> (i32, i32, i32) {
    %c0_i32 = arith.constant 0 : i32
    %c0_i32_0 = arith.constant 0 : i32
    %c0_i32_1 = arith.constant 0 : i32
    return %arg0, %c0_i32, %c0_i32_0 : i32, i32, i32
  }
}

</mosaic_0001>

<bundles_post_ra>
// kernel: tpu_custom_call.1
= control target key start
LH: loop header
LB: loop body
LE: loop exit
PB: predicated region body
PF: predicated region fallthrough
CT: control target
= control target key end

     0   :  { %9 = vsyncpa [#allocation3], 0  ;;  %s917_s0 = inlined_call_operand.hbm [shape: f32[2,8,32], index: 0, kind: input, shape index: {}]   ;;  %s918_s1 = inlined_call_operand.hbm [shape: f32[8,8], index: 1, kind: input, shape index: {}]   ;;  %s919_s2 = inlined_call_operand.hbm [shape: f32[32,32], index: 2, kind: input, shape index: {}]   ;;  %s920_s3 = inlined_call_operand.hbm [shape: f32[8,32], index: 3, kind: input, shape index: {}]   ;;  %s921_s4 = inlined_call_operand.hbm [shape: f32[2,8,32], index: 4, kind: output, shape index: {}]  }
   0x1   :  { %11 = vsyncpa [#allocation3 + $0x1], 0 }
   0x2   :  { %12 = vsyncpa [#allocation6], 0 }
   0x3   :  { %13 = vsyncpa [#allocation9], 0 }
   0x4   :  { %14 = vsyncpa [#allocation4], 0 }
   0x5   :  { %16 = vsyncpa [#allocation4 + $0x1], 0  ;;  %s759_s15 = smov 0   ;;  %s761_s16 = smov 0  }
   0x6   :  { %s763_s17 = smov 0   ;;  %s765_s18 = smov 0  }
   0x7 LB: > { %s780_s19 = sadd.s32 4294967295, %s727_s18   ;;  %s434_s20 = sadd.s32 4294967294, %s727_s18   ;;  %s727_s18 = sphi %s765_s18, %s932_s18   ;;  %s723_s17 = sphi %s763_s17, %s931_s17   ;;  %s719_s16 = sphi %s761_s16, %s930_s16   ;;  %s715_s15 = sphi %s759_s15, %s929_s15  }
   0x8   : > { %p42_p0 = scmp.ne.s32.totalorder %s719_s16, %s715_s15  ;;  %p43_p1 = scmp.eq.s32.totalorder %s780_s19, 0 }
   0x9   : > { %p129_p2 = scmp.eq.s32.totalorder %s780_s19, 1  ;;  %p135_p3 = scmp.eq.s32.totalorder %s434_s20, 1 }
   0xa   : > { %p789_p4 = por %p43_p1, %p42_p0  ;;  %p435_p5 = scmp.ge.s32.totalorder %s727_s18, 1 }
   0xb   : > { %p794_p6 = por %p135_p3, %p42_p0  ;;  %p142_p7 = scmp.lt.s32.totalorder %s727_s18, 3 }
   0xc   : > { %s154_s25 = sshll.u32 %s918_s1, 4  ;;  %s729_s27 = smov [#allocation5]   ;;  %s155_s25 = int_to_ptr.hbm [resolvable:$true] %s154_s25 }
   0xd   : > { %p802_p8 = pnand %p435_p5, %p142_p7  ;;  %s156_s28 = sshll.u32 %s729_s27, 4  ;;  %s157_s28 = int_to_ptr.vmem [resolvable:$true] %s156_s28 }
   0xe   : > { %s165_s5 = sshll.u32 %s919_s2, 4  ;;  %s730_s7 = smov [#allocation7]   ;;  %s166_s5 = int_to_ptr.hbm [resolvable:$true] %s165_s5 }
   0xf   : > { %p470_p10 = pneg %p802_p8  ;;  %s167_s8 = sshll.u32 %s730_s7, 4  ;;  %s168_s8 = int_to_ptr.vmem [resolvable:$true] %s167_s8 }
  0x10   : > { %s731_s9 = smov 128   ;;  %s732_s10 = smov 8  }
  0x11   : > { %p814_p11 = pnand %p470_p10, %p43_p1  ;;  %s180_s13 = sshll.u32 %s920_s3, 4  ;;  %s181_s13 = int_to_ptr.hbm [resolvable:$true] %s180_s13 }
  0x12   : > { %s733_s14 = smov [#allocation8]   ;;  %s828_s23 = sadd.s32 1, %s727_s18  }
  0x13   : > { %473 = dma.hbm_to_vmem [thread:$0]  (!%p814_p11), %s155_s25, 128, %s157_s28, [#allocation6]  }
  0x14   : > { %476 = dma.hbm_to_vmem [thread:$0]  (!%p814_p11), %s166_s5, 512, %s168_s8, [#allocation6], %s731_s9, %s731_s9, %s732_s10  }
  0x15   : > { %s182_s20 = sshll.u32 %s733_s14, 4  ;;  %s26_s24 = ssub.s32 %s727_s18, %s828_s23  ;;  %s183_s20 = int_to_ptr.vmem [resolvable:$true] %s182_s20 }
  0x16   : > { %479 = dma.hbm_to_vmem [thread:$0]  (!%p814_p11), %s181_s13, 128, %s183_s20, [#allocation9]  }
  0x17   : > { %s29_s25 = sadd.s32 1, %s723_s17  ;;  %p27_p12 = scmp.eq.s32.totalorder %s26_s24, 0 }
  0x18   : > { %p36_p13 = scmp.ne.s32.totalorder %s723_s17, %s719_s16  ;;  %p37_p0 = scmp.eq.s32.totalorder %s727_s18, 0 }
  0x19   : > { %s837_s27 = scalar_select %p27_p12, %s723_s17, %s29_s25  }
  0x1a   : > { %p841_p3 = por %p129_p2, %p36_p13  ;;  %p491_p5 = scmp.lt.s32.totalorder %s727_s18, 2 }
  0x1b   : > { %s193_s29 = sand.u32 1, %s723_s17   ;;  %s441_s30 = sshll.u32 %s727_s18, 3 }
  0x1c   : > { %p38_p7 = por %p37_p0, %p36_p13  ;;  %s440_s5 = sshll.u32 %s193_s29, 3 }
  0x1d   : > { %s201_s8 = scalar_lea.hbm %s917_s0, %s441_s30  ;;  %s197_s10 = scalar_lea.vmem [#allocation2], %s440_s5 }
  0x1e   : > { %s203_s9 = sshll.u32 %s201_s8, 4  ;;  %s205_s11 = sshll.u32 %s197_s10, 4  ;;  %s204_s9 = int_to_ptr.hbm [resolvable:$true] %s203_s9  ;;  %s206_s11 = int_to_ptr.vmem [resolvable:$true] %s205_s11 }
  0x1f   : > { %p851_p10 = pnand %p491_p5, %p38_p7  ;;  %s194_s13 = scalar_lea.sflag [#allocation3], %s193_s29 }
  0x20   : > { %s623_s14 = sshra.s32 %s204_s9, 4  ;;  %s630_s30 = scalar_lea.hbm %s917_s0, 16  ;;  %s624_s14 = int_to_ptr.hbm [resolvable:$true] %s623_s14 }
  0x21   : > { %s625_s20 = scalar_lea.hbm %s624_s14, 8  ;;  %p627_p11 = pneg %p851_p10 }
  0x22   : > { %p626_p2 = scmp.ne.s32.totalorder %s624_s14, %s625_s20  ;;  %p631_p0 = scmp.lt.s32.totalorder %s624_s14, %s917_s0 }
  0x23   : > { %p632_p5 = scmp.lt.s32.totalorder %s630_s30, %s625_s20 }
  0x24   : > { %p628_p12 = pnand %p627_p11, %p626_p2 }
  0x25   : > { %p633_p7 = por %p632_p5, %p631_p0 }
  0x26   : > { %p629_p13 = pneg %p628_p12 }
  0x28   : > { %p634_p9 = pnand %p633_p7, %p629_p13 }
  0x2a   : > { %637 = shalt.err (!%p634_p9)
}
  0x2b   : > { %483 = dma.hbm_to_vmem [thread:$0]  (!%p851_p10), %s204_s9, 128, %s206_s11, %s194_s13  }
  0x2c   : > { %214 = sbr.rel (%p802_p8) target bundleno = 315 (0x13b), region = 36  ;;  %s868_s29 = sand.u32 (!%p802_p8), 1, %s719_s16  }
  0x2d   : > { %s443_s7 = sshll.u32 (!%p802_p8), %s868_s29, 3  ;;  %s217_s8 = scalar_lea.sflag (!%p802_p8), [#allocation3], %s868_s29 }
  0x2e   : > { %s220_s10 = scalar_lea.vmem (!%p802_p8), [#allocation2], %s443_s7 }
  0x31   : > { %698 = dma.done.wait (%p789_p4), %s217_s8, 128  }
  0x32   : > { %700 = vsyncadd (%p789_p4), %s217_s8, 4294967168 }
  0x33   : > { %702 = dma.done.wait (%p43_p1), [#allocation6], 640  }
  0x34   : > { %704 = vsyncadd (%p43_p1), [#allocation6], 4294966656 }
  0x35   : > { %706 = dma.done.wait (%p43_p1), [#allocation9], 128  }
  0x36   : > { %708 = vsyncadd (%p43_p1), [#allocation9], 4294967168  ;;  %vm263_vm0 = vcmask 64512   ;;  %v262_v0 = vld [vmem:[%s220_s10] sm:$0xff]  ;;  %v261_v1 = vld [vmem:[#allocation5] sm:$0xff]  ;;  %vm291_vm1 = vcmask 261120  }
  0x37   : > { %v290_v2 = vld [vmem:[#allocation7 + $0x18] sm:$0xff]  ;;  %282 = vmatpush.msra.mxu0 %v262_v0  ;;  %v289_v3 = vld [vmem:[#allocation7 + $0x10] sm:$0xff]  ;;  %v288_v4 = vld [vmem:[#allocation7 + $0x8] sm:$0xff]  ;;  %s451_s21 = sshll.u32 %s780_s19, 3  ;;  %s260_s12 = scalar_lea.vmem [#allocation10], %s443_s7 }
  0x38   : > { %307 = vmatpush.msra.mxu1 %v290_v2  ;;  %448 = vmatmul.msk.f32.vlgmr.msra.gmra.mxu0 %vm263_vm0, %v261_v1  ;;  %v287_v5 = vld [vmem:[#allocation7] sm:$0xff]  ;;  %s330_s11 = scalar_lea.hbm %s921_s4, %s451_s21  ;;  %s332_s13 = sshll.u32 %s260_s12, 4  ;;  %s333_s13 = int_to_ptr.vmem [resolvable:$true] %s332_s13 }
  0x39   : > { %v315_v7 = vld [vmem:[#allocation8] sm:$0xff]  ;;  %s334_s14 = sshll.u32 %s330_s11, 4  ;;  %s320_s20 = scalar_lea.sflag [#allocation4], %s868_s29  ;;  %s335_s14 = int_to_ptr.hbm [resolvable:$true] %s334_s14 }
  0x3a   : > { %308 = vmatpush.msra.mxu1 %v289_v3  ;;  %s667_s24 = sshra.s32 %s335_s14, 4  ;;  %s673_s5 = scalar_lea.hbm %s921_s4, 16  ;;  %s668_s24 = int_to_ptr.hbm [resolvable:$true] %s667_s24 }
  0x3b   : > { %s669_s25 = scalar_lea.hbm %s668_s24, 8  ;;  %p674_p9 = scmp.lt.s32.totalorder %s668_s24, %s921_s4 }
  0x3c   : > { %309 = vmatpush.msra.mxu1 %v288_v4  ;;  %p670_p1 = scmp.ne.s32.totalorder %s668_s24, %s669_s25  ;;  %p675_p10 = scmp.lt.s32.totalorder %s673_s5, %s669_s25 }
  0x3e   : > { %310 = vmatpush.msra.mxu1 %v287_v5  ;;  %p671_p4 = pnand %p670_p1, %p841_p3  ;;  %p676_p2 = por %p675_p10, %p674_p9 }
  0x40   : > { %p672_p8 = pneg %p671_p4 }
  0x42   : > { %p677_p11 = pnand %p676_p2, %p672_p8 }
  0xb5   : > { %v284_v6 = vpop.f32.mrf.mxu0 }
  0xb6   : > { %449 = vmatmul.msk.f32.vlgmr.msra.gmra.mxu1 %vm291_vm1, %v284_v6 }
 0x133   : > { %v312_v8 = vpop.f32.mrf.mxu1 }
 0x134   : > { %v316_v9 = vadd.f32 %v315_v7, %v312_v8 }
 0x136   : > { %v317_v10 = vmax.f32 %v316_v9, 0.0 }
 0x138   : > { %318 = vst.msk [vmem:[%s260_s12] sm:$0xff] %vm291_vm1, %v317_v10 }
 0x139   : > { %680 = shalt.err (!%p677_p11)
}
 0x13a   : > { %468 = dma.vmem_to_hbm [thread:$0]  (%p841_p3), %s333_s13, 128, %s335_s14, %s320_s20  }
 0x13b PF: > { %s346_s29 = sand.u32 1, %s715_s15   ;;  %p928_p12 = scmp.ge.s32.totalorder %s727_s18, 2 }
 0x13c   : > { %s347_s8 = scalar_lea.sflag [#allocation4], %s346_s29 }
 0x13d   : > { %p485_p13 = pnand %p928_p12, %p794_p6 }
 0x13f   : > { %p486_p0 = pneg %p485_p13 }
 0x141   : > { %710 = dma.done.wait (%p486_p0), %s347_s8, 128  }
 0x142   : > { %712 = vsyncadd (%p486_p0), %s347_s8, 4294967168  ;;  %p19_p5 = scmp.ge.s32.totalorder %s828_s23, 4   ;;  %s929_s15 = smov %s719_s16 }
 0x143   : > { %s930_s16 = smov %s723_s17  ;;  %s931_s17 = smov %s837_s27 }
 0x144   : > { %s932_s18 = smov %s828_s23  ;;  %21 = sbr.rel (!%p19_p5) target bundleno = 7 (0x7), region = 93 }
 0x149   :  { %353 = vsyncpa [#allocation3], 1 }
 0x14a   :  { %355 = vsyncpa [#allocation3 + $0x1], 1 }
 0x14b   :  { %356 = vsyncpa [#allocation6], 1 }
 0x14c   :  { %357 = vsyncpa [#allocation9], 1 }
 0x14d   :  { %358 = vsyncpa [#allocation4], 1 }
 0x14e   :  { %360 = vsyncpa [#allocation4 + $0x1], 1 }

</bundles_post_ra>
